<compile_context>
chip_gen: v5e
topology: v5e:2x2
jax: 0.10.0
libtpu: 0.0.40
codegen_flags: <defaults>
</compile_context>

<pallas_src>
import jax
import jax.numpy as jnp
from jax.experimental import pallas as pl
from jax.experimental.pallas import tpu as pltpu

_LANE = 128
_SUBLANE = 8
_MIN_PAD = _LANE * _SUBLANE          # pad flat length to a multiple of 1024
_ROW_TILE = 1024                     # rows per block in the tiled (large) path
_MAX_ROWS_SINGLE = 2048              # <= ~1 MiB f32 per operand -> single block


def _add_kernel(a_ref, b_ref, o_ref):
    o_ref[...] = a_ref[...] + b_ref[...]


def pallas_add(x277, x263):
    assert x277.shape == x263.shape and x277.dtype == x263.dtype
    orig_shape = x277.shape
    dtype = x277.dtype
    n = x277.size
    itemsize = jnp.dtype(dtype).itemsize

    # Flatten and pad to a lane-dense [rows, 128] slab.
    a_flat = x277.reshape(-1)
    b_flat = x263.reshape(-1)

    rows_small = pl.cdiv(n, _MIN_PAD) * _SUBLANE
    use_tiled = rows_small > _MAX_ROWS_SINGLE

    if use_tiled:
        # Pad so the row count divides evenly into ROW_TILE blocks.
        n_pad = pl.cdiv(n, _ROW_TILE * _LANE) * (_ROW_TILE * _LANE)
    else:
        n_pad = pl.cdiv(n, _MIN_PAD) * _MIN_PAD

    if n_pad != n:
        a_flat = jnp.pad(a_flat, (0, n_pad - n))
        b_flat = jnp.pad(b_flat, (0, n_pad - n))

    rows = n_pad // _LANE
    a2 = a_flat.reshape(rows, _LANE)
    b2 = b_flat.reshape(rows, _LANE)

    cost = pl.CostEstimate(
        flops=n_pad,
        transcendentals=0,
        bytes_accessed=3 * n_pad * itemsize,
    )

    if not use_tiled:
        # Small case: one whole-array VMEM block, no grid, output aliased onto
        # the first (padded) operand.
        out2 = pl.pallas_call(
            _add_kernel,
            out_shape=jax.ShapeDtypeStruct((rows, _LANE), dtype),
            in_specs=[
                pl.BlockSpec(memory_space=pltpu.MemorySpace.VMEM),
                pl.BlockSpec(memory_space=pltpu.MemorySpace.VMEM),
            ],
            out_specs=pl.BlockSpec(memory_space=pltpu.MemorySpace.VMEM),
            input_output_aliases={0: 0},
            cost_estimate=cost,
        )(a2, b2)
    else:
        # Large case: row-tiled, parallel grid so multi-TC chips (v7x) split it
        # and VMEM stays bounded (~0.5 MiB per operand block in f32).
        grid = rows // _ROW_TILE
        out2 = pl.pallas_call(
            _add_kernel,
            out_shape=jax.ShapeDtypeStruct((rows, _LANE), dtype),
            grid=(grid,),
            in_specs=[
                pl.BlockSpec((_ROW_TILE, _LANE), lambda i: (i, 0)),
                pl.BlockSpec((_ROW_TILE, _LANE), lambda i: (i, 0)),
            ],
            out_specs=pl.BlockSpec((_ROW_TILE, _LANE), lambda i: (i, 0)),
            input_output_aliases={0: 0},
            compiler_params=pltpu.CompilerParams(
                dimension_semantics=("parallel",)
            ),
            cost_estimate=cost,
        )(a2, b2)

    return out2.reshape(-1)[:n].reshape(orig_shape)


if __name__ == "__main__":
    key = jax.random.PRNGKey(0)
    k1, k2 = jax.random.split(key)
    # Shapes from the module's forward: [1, 144, 14, 14]
    x277 = jax.random.normal(k1, (1, 144, 14, 14), dtype=jnp.float32)
    x263 = jax.random.normal(k2, (1, 144, 14, 14), dtype=jnp.float32)

    out = pallas_add(x277, x263)
    jax.block_until_ready(out)

    ref = x277 + x263
    assert out.shape == ref.shape
    assert jnp.allclose(out, ref, atol=1e-6, rtol=1e-6)
    print("KERNEL_OK")
</pallas_src>

<mosaic_0001>
module attributes {stable_mosaic.version = 11 : i64} {
  func.func @_add_kernel(%arg0: memref<224x128xf32, #tpu.memory_space<vmem>>, %arg1: memref<224x128xf32, #tpu.memory_space<vmem>>, %arg2: memref<224x128xf32, #tpu.memory_space<vmem>>) attributes {dimension_semantics = [], scalar_prefetch = 0 : i64, scratch_operands = 0 : i64, tpu.core_type = #tpu.core_type<tc>} {
    %c0 = arith.constant 0 : index
    %c0_0 = arith.constant 0 : index
    %0 = vector.load %arg0[%c0, %c0_0] : memref<224x128xf32, #tpu.memory_space<vmem>>, vector<224x128xf32>
    %c0_1 = arith.constant 0 : index
    %c0_2 = arith.constant 0 : index
    %1 = vector.load %arg1[%c0_1, %c0_2] : memref<224x128xf32, #tpu.memory_space<vmem>>, vector<224x128xf32>
    %2 = arith.addf %0, %1 : vector<224x128xf32>
    %c0_3 = arith.constant 0 : index
    %c0_4 = arith.constant 0 : index
    %3 = vector.load %arg2[%c0_3, %c0_4] : memref<224x128xf32, #tpu.memory_space<vmem>>, vector<224x128xf32>
    tpu.vector_store %arg2[%c0_3, %c0_4], %2 {strides = array<i32>} : memref<224x128xf32, #tpu.memory_space<vmem>>, vector<224x128xf32>,
    return
  }
}

</mosaic_0001>

<bundles_post_ra>
// kernel: tpu_custom_call.1
= control target key start
LH: loop header
LB: loop body
LE: loop exit
PB: predicated region body
PF: predicated region fallthrough
CT: control target
= control target key end

     0   :  { %7 = vsyncpa [#allocation3], 0  ;;  %s330_s0 = inlined_call_operand.hbm [shape: f32[224,128], index: 0, kind: input, shape index: {}, may-alias: {0,2}]   ;;  %s331_s1 = inlined_call_operand.vmem [shape: f32[224,128], index: 1, kind: input, shape index: {}]   ;;  %s332_s2 = inlined_call_operand.hbm [shape: f32[224,128], index: 2, kind: output, shape index: {}, may-alias: {0,2}]  }
   0x1   :  { %8 = vsyncpa [#allocation4], 0  ;;  %s13_s11 = sshll.u32 %s330_s0, 4  ;;  %s215_s12 = smov [#allocation2]   ;;  %s14_s11 = int_to_ptr.hbm [resolvable:$true] %s13_s11 }
   0x2   :  { %s15_s13 = sshll.u32 %s215_s12, 4  ;;  %s216_s14 = smov 128   ;;  %s16_s13 = int_to_ptr.vmem [resolvable:$true] %s15_s13 }
   0x3   :  { %s217_s15 = smov 8  }
   0x4   :  { %21 = dma.hbm_to_vmem [thread:$0]  %s14_s11, 3584, %s16_s13, [#allocation3], %s216_s14, %s216_s14, %s217_s15  }
   0x5   :  { %211 = dma.done.wait [#allocation3], 3584  }
   0x6   :  { %212 = vsyncadd [#allocation3], 4294963712  ;;  %v28_v0 = vld [vmem:[#allocation2] sm:$0xff]  ;;  %v29_v2 = vld [vmem:[#allocation2 + $0x8] sm:$0xff]  ;;  %s218_s0 = smov [#allocation5]   ;;  %s146_s21 = sshll.u32 %s332_s2, 4  ;;  %s147_s21 = int_to_ptr.hbm [resolvable:$true] %s146_s21 }
   0x7   :  { %v56_v1 = vld [vmem:[%s331_s1] sm:$0xff]  ;;  %v57_v4 = vld [vmem:[%s331_s1 + $0x8] sm:$0xff]  ;;  %v30_v5 = vld [vmem:[#allocation2 + $0x10] sm:$0xff]  ;;  %s144_s18 = sshll.u32 %s218_s0, 4  ;;  %s145_s18 = int_to_ptr.vmem [resolvable:$true] %s144_s18 }
   0x8   :  { %v84_v3 = vadd.f32 %v56_v1, %v28_v0  ;;  %v58_v6 = vld [vmem:[%s331_s1 + $0x10] sm:$0xff]  ;;  %v85_v7 = vadd.f32 %v57_v4, %v29_v2  ;;  %v31_v9 = vld [vmem:[#allocation2 + $0x18] sm:$0xff]  ;;  %v32_v11 = vld [vmem:[#allocation2 + $0x20] sm:$0xff] }
   0x9   :  { %v86_v8 = vadd.f32 %v58_v6, %v30_v5  ;;  %v59_v10 = vld [vmem:[%s331_s1 + $0x18] sm:$0xff]  ;;  %v60_v13 = vld [vmem:[%s331_s1 + $0x20] sm:$0xff]  ;;  %v33_v14 = vld [vmem:[#allocation2 + $0x28] sm:$0xff] }
   0xa   :  { %112 = vst [vmem:[#allocation5] sm:$0xff] %v84_v3  ;;  %v87_v12 = vadd.f32 %v59_v10, %v31_v9  ;;  %v61_v15 = vld [vmem:[%s331_s1 + $0x28] sm:$0xff]  ;;  %v88_v16 = vadd.f32 %v60_v13, %v32_v11  ;;  %v34_v18 = vld [vmem:[#allocation2 + $0x30] sm:$0xff]  ;;  %v35_v20 = vld [vmem:[#allocation2 + $0x38] sm:$0xff] }
   0xb   :  { %113 = vst [vmem:[#allocation5 + $0x8] sm:$0xff] %v85_v7  ;;  %v89_v17 = vadd.f32 %v61_v15, %v33_v14  ;;  %v62_v19 = vld [vmem:[%s331_s1 + $0x30] sm:$0xff]  ;;  %v63_v22 = vld [vmem:[%s331_s1 + $0x38] sm:$0xff]  ;;  %v36_v23 = vld [vmem:[#allocation2 + $0x40] sm:$0xff] }
   0xc   :  { %114 = vst [vmem:[#allocation5 + $0x10] sm:$0xff] %v86_v8  ;;  %v90_v21 = vadd.f32 %v62_v19, %v34_v18  ;;  %v64_v24 = vld [vmem:[%s331_s1 + $0x40] sm:$0xff]  ;;  %v91_v25 = vadd.f32 %v63_v22, %v35_v20  ;;  %v37_v26 = vld [vmem:[#allocation2 + $0x48] sm:$0xff]  ;;  %v38_v28 = vld [vmem:[#allocation2 + $0x50] sm:$0xff] }
   0xd   :  { %115 = vst [vmem:[#allocation5 + $0x18] sm:$0xff] %v87_v12  ;;  %v65_v27 = vld [vmem:[%s331_s1 + $0x48] sm:$0xff]  ;;  %v92_v29 = vadd.f32 %v64_v24, %v36_v23  ;;  %v66_v30 = vld [vmem:[%s331_s1 + $0x50] sm:$0xff]  ;;  %v39_v31 = vld [vmem:[#allocation2 + $0x58] sm:$0xff] }
   0xe   :  { %116 = vst [vmem:[#allocation5 + $0x20] sm:$0xff] %v88_v16  ;;  %v67_v32 = vld [vmem:[%s331_s1 + $0x58] sm:$0xff]  ;;  %v93_v33 = vadd.f32 %v65_v27, %v37_v26  ;;  %v40_v34 = vld [vmem:[#allocation2 + $0x60] sm:$0xff]  ;;  %v94_v36 = vadd.f32 %v66_v30, %v38_v28  ;;  %v41_v37 = vld [vmem:[#allocation2 + $0x68] sm:$0xff] }
   0xf   :  { %117 = vst [vmem:[#allocation5 + $0x28] sm:$0xff] %v89_v17  ;;  %v68_v35 = vld [vmem:[%s331_s1 + $0x60] sm:$0xff]  ;;  %v69_v38 = vld [vmem:[%s331_s1 + $0x68] sm:$0xff]  ;;  %v95_v39 = vadd.f32 %v67_v32, %v39_v31  ;;  %v42_v40 = vld [vmem:[#allocation2 + $0x70] sm:$0xff] }
  0x10   :  { %118 = vst [vmem:[#allocation5 + $0x30] sm:$0xff] %v90_v21  ;;  %v70_v41 = vld [vmem:[%s331_s1 + $0x70] sm:$0xff]  ;;  %v96_v42 = vadd.f32 %v68_v35, %v40_v34  ;;  %v43_v43 = vld [vmem:[#allocation2 + $0x78] sm:$0xff]  ;;  %v97_v45 = vadd.f32 %v69_v38, %v41_v37  ;;  %v44_v46 = vld [vmem:[#allocation2 + $0x80] sm:$0xff] }
  0x11   :  { %119 = vst [vmem:[#allocation5 + $0x38] sm:$0xff] %v91_v25  ;;  %v71_v44 = vld [vmem:[%s331_s1 + $0x78] sm:$0xff]  ;;  %v72_v47 = vld [vmem:[%s331_s1 + $0x80] sm:$0xff]  ;;  %v98_v48 = vadd.f32 %v70_v41, %v42_v40  ;;  %v45_v49 = vld [vmem:[#allocation2 + $0x88] sm:$0xff] }
  0x12   :  { %120 = vst [vmem:[#allocation5 + $0x40] sm:$0xff] %v92_v29  ;;  %v73_v50 = vld [vmem:[%s331_s1 + $0x88] sm:$0xff]  ;;  %v99_v51 = vadd.f32 %v71_v44, %v43_v43  ;;  %v46_v52 = vld [vmem:[#allocation2 + $0x90] sm:$0xff]  ;;  %v100_v54 = vadd.f32 %v72_v47, %v44_v46  ;;  %v47_v55 = vld [vmem:[#allocation2 + $0x98] sm:$0xff] }
  0x13   :  { %121 = vst [vmem:[#allocation5 + $0x48] sm:$0xff] %v93_v33  ;;  %v74_v53 = vld [vmem:[%s331_s1 + $0x90] sm:$0xff]  ;;  %v75_v56 = vld [vmem:[%s331_s1 + $0x98] sm:$0xff]  ;;  %v101_v57 = vadd.f32 %v73_v50, %v45_v49  ;;  %v48_v58 = vld [vmem:[#allocation2 + $0xa0] sm:$0xff] }
  0x14   :  { %122 = vst [vmem:[#allocation5 + $0x50] sm:$0xff] %v94_v36  ;;  %v76_v59 = vld [vmem:[%s331_s1 + $0xa0] sm:$0xff]  ;;  %v102_v60 = vadd.f32 %v74_v53, %v46_v52  ;;  %v49_v61 = vld [vmem:[#allocation2 + $0xa8] sm:$0xff]  ;;  %v103_v63 = vadd.f32 %v75_v56, %v47_v55  ;;  %v50_v0 = vld [vmem:[#allocation2 + $0xb0] sm:$0xff] }
  0x15   :  { %123 = vst [vmem:[#allocation5 + $0x58] sm:$0xff] %v95_v39  ;;  %v77_v62 = vld [vmem:[%s331_s1 + $0xa8] sm:$0xff]  ;;  %v78_v1 = vld [vmem:[%s331_s1 + $0xb0] sm:$0xff]  ;;  %v104_v2 = vadd.f32 %v76_v59, %v48_v58  ;;  %v51_v3 = vld [vmem:[#allocation2 + $0xb8] sm:$0xff] }
  0x16   :  { %124 = vst [vmem:[#allocation5 + $0x60] sm:$0xff] %v96_v42  ;;  %v79_v4 = vld [vmem:[%s331_s1 + $0xb8] sm:$0xff]  ;;  %v105_v5 = vadd.f32 %v77_v62, %v49_v61  ;;  %v52_v6 = vld [vmem:[#allocation2 + $0xc0] sm:$0xff]  ;;  %v106_v8 = vadd.f32 %v78_v1, %v50_v0  ;;  %v53_v9 = vld [vmem:[#allocation2 + $0xc8] sm:$0xff] }
  0x17   :  { %125 = vst [vmem:[#allocation5 + $0x68] sm:$0xff] %v97_v45  ;;  %v80_v7 = vld [vmem:[%s331_s1 + $0xc0] sm:$0xff]  ;;  %v81_v10 = vld [vmem:[%s331_s1 + $0xc8] sm:$0xff]  ;;  %v107_v11 = vadd.f32 %v79_v4, %v51_v3  ;;  %v54_v12 = vld [vmem:[#allocation2 + $0xd0] sm:$0xff] }
  0x18   :  { %126 = vst [vmem:[#allocation5 + $0x70] sm:$0xff] %v98_v48  ;;  %v82_v13 = vld [vmem:[%s331_s1 + $0xd0] sm:$0xff]  ;;  %v108_v14 = vadd.f32 %v80_v7, %v52_v6  ;;  %v55_v15 = vld [vmem:[#allocation2 + $0xd8] sm:$0xff]  ;;  %v109_v17 = vadd.f32 %v81_v10, %v53_v9 }
  0x19   :  { %127 = vst [vmem:[#allocation5 + $0x78] sm:$0xff] %v99_v51  ;;  %v83_v16 = vld [vmem:[%s331_s1 + $0xd8] sm:$0xff]  ;;  %v110_v18 = vadd.f32 %v82_v13, %v54_v12 }
  0x1a   :  { %128 = vst [vmem:[#allocation5 + $0x80] sm:$0xff] %v100_v54  ;;  %v111_v19 = vadd.f32 %v83_v16, %v55_v15 }
  0x1b   :  { %129 = vst [vmem:[#allocation5 + $0x88] sm:$0xff] %v101_v57 }
  0x1c   :  { %130 = vst [vmem:[#allocation5 + $0x90] sm:$0xff] %v102_v60 }
  0x1d   :  { %131 = vst [vmem:[#allocation5 + $0x98] sm:$0xff] %v103_v63 }
  0x1e   :  { %132 = vst [vmem:[#allocation5 + $0xa0] sm:$0xff] %v104_v2 }
  0x1f   :  { %133 = vst [vmem:[#allocation5 + $0xa8] sm:$0xff] %v105_v5 }
  0x20   :  { %134 = vst [vmem:[#allocation5 + $0xb0] sm:$0xff] %v106_v8 }
  0x21   :  { %135 = vst [vmem:[#allocation5 + $0xb8] sm:$0xff] %v107_v11 }
  0x22   :  { %136 = vst [vmem:[#allocation5 + $0xc0] sm:$0xff] %v108_v14 }
  0x23   :  { %137 = vst [vmem:[#allocation5 + $0xc8] sm:$0xff] %v109_v17 }
  0x24   :  { %138 = vst [vmem:[#allocation5 + $0xd0] sm:$0xff] %v110_v18 }
  0x25   :  { %139 = vst [vmem:[#allocation5 + $0xd8] sm:$0xff] %v111_v19 }
  0x26   :  { %152 = dma.vmem_to_hbm [thread:$0]  %s145_s18, 3584, %s147_s21, [#allocation4], %s216_s14, %s216_s14, %s217_s15  }
  0x27   :  { %213 = dma.done.wait [#allocation4], 3584  }
  0x28   :  { %214 = vsyncadd [#allocation4], 4294963712 }
  0x29   :  { %157 = vsyncpa [#allocation3], 1 }
  0x2a   :  { %158 = vsyncpa [#allocation4], 1 }

</bundles_post_ra>
